<compile_context>
chip_gen: v6e
topology: v6e:2x2x1
jax: 0.10.0
libtpu: 0.0.40
codegen_flags: <defaults>
</compile_context>

<pallas_src>
import jax
import jax.numpy as jnp
from jax.experimental import pallas as pl
from jax.experimental.pallas import tpu as pltpu


def _round_up(x, m):
    return ((x + m - 1) // m) * m


def ffn_kernel(x_ref, w1_ref, b1_ref, w2_ref, b2_ref, o_ref, acc_ref):
    k = pl.program_id(1)

    @pl.when(k == 0)
    def _():
        acc_ref[...] = jnp.zeros_like(acc_ref)

    # fc1 slab: (rows, d_model_p) @ (d_model_p, bh) -> f32 on the MXU, + b1 slab.
    h = jnp.dot(x_ref[...], w1_ref[...], preferred_element_type=jnp.float32)
    h = h + b1_ref[...].astype(jnp.float32)
    # TODO(synk): dropout is identity (eval mode); training-mode dropout would use
    # pltpu.prng_seed (step-dependent seed) + pltpu.prng_random_bits for the mask.

    # fc2 partial sum over the hidden axis: cast h back to the weight dtype so the
    # matmul stays on the fast bf16 MXU path; accumulate in f32.
    acc_ref[...] += jnp.dot(h.astype(w2_ref.dtype), w2_ref[...],
                            preferred_element_type=jnp.float32)

    @pl.when(k == pl.num_programs(1) - 1)
    def _():
        o_ref[...] = (acc_ref[...] + b2_ref[...].astype(jnp.float32)).astype(o_ref.dtype)


def positionwise_ffn(x, w1, b1, w2, b2, *, block_rows=256, block_hidden=512,
                     compute_dtype=jnp.bfloat16):
    """x: (B, S, d_model). PyTorch-layout params:
    w1: (hidden, d_model), b1: (hidden,), w2: (d_model, hidden), b2: (d_model,)."""
    B, S, d_model = x.shape
    hidden = w1.shape[0]
    out_dtype = x.dtype
    N = B * S

    # Lane-dense feature padding (multiples of 128).
    d_p = _round_up(d_model, 128)
    bh = _round_up(min(block_hidden, _round_up(hidden, 128)), 128)
    h_p = _round_up(hidden, bh)

    # Row tiling: big blocks, clamped for tiny inputs, padded instead of asserted.
    br = _round_up(min(block_rows, _round_up(N, 8)), 8)
    n_p = _round_up(N, br)

    # Transpose weights to (in, out), cast to compute dtype, zero-pad (zero rows/cols
    # contribute nothing; padded outputs are sliced off below).
    w1_t = jnp.zeros((d_p, h_p), compute_dtype).at[:d_model, :hidden].set(
        w1.T.astype(compute_dtype))
    w2_t = jnp.zeros((h_p, d_p), compute_dtype).at[:hidden, :d_model].set(
        w2.T.astype(compute_dtype))
    b1_p = jnp.zeros((1, h_p), compute_dtype).at[0, :hidden].set(b1.astype(compute_dtype))
    b2_p = jnp.zeros((1, d_p), compute_dtype).at[0, :d_model].set(b2.astype(compute_dtype))
    x2 = jnp.zeros((n_p, d_p), compute_dtype).at[:N, :d_model].set(
        x.reshape(N, d_model).astype(compute_dtype))

    grid = (n_p // br, h_p // bh)  # reduction (hidden) axis last

    # Explicit VMEM budget: double-buffered tiles + f32 accumulator + fc1 intermediate.
    cb = jnp.dtype(compute_dtype).itemsize
    ob = jnp.dtype(out_dtype).itemsize
    footprint = 2 * (br * d_p * cb        # x tile
                     + d_p * bh * cb      # w1 slab
                     + 8 * bh * cb        # b1 slab (sublane-padded)
                     + bh * d_p * cb      # w2 slab
                     + 8 * d_p * cb       # b2
                     + br * d_p * ob)     # out tile
    footprint += br * d_p * 4             # f32 accumulator scratch
    footprint += br * bh * (4 + cb)       # fc1 intermediate (f32 + bf16 cast)
    vmem_limit = int(min(96 * 2**20, max(32 * 2**20, 2 * footprint)))

    out = pl.pallas_call(
        ffn_kernel,
        out_shape=jax.ShapeDtypeStruct((n_p, d_p), out_dtype),
        grid_spec=pltpu.PrefetchScalarGridSpec(
            num_scalar_prefetch=0,
            grid=grid,
            in_specs=[
                pl.BlockSpec((br, d_p), lambda i, k: (i, 0)),   # x rows (resident over k)
                pl.BlockSpec((d_p, bh), lambda i, k: (0, k)),   # w1 slab
                pl.BlockSpec((1, bh), lambda i, k: (0, k)),     # b1 slab
                pl.BlockSpec((bh, d_p), lambda i, k: (k, 0)),   # w2 slab
                pl.BlockSpec((1, d_p), lambda i, k: (0, 0)),    # b2
            ],
            out_specs=pl.BlockSpec((br, d_p), lambda i, k: (i, 0)),
            scratch_shapes=[pltpu.VMEM((br, d_p), jnp.float32)],
        ),
        compiler_params=pltpu.CompilerParams(
            dimension_semantics=("parallel", "arbitrary"),
            vmem_limit_bytes=vmem_limit,
        ),
    )(x2, w1_t, b1_p, w2_t, b2_p)

    return out[:N, :d_model].reshape(B, S, d_model)


if __name__ == "__main__":
    # Small shapes implied by the module: x: (batch, seq, d_model)
    batch, seq, d_model, hidden = 2, 8, 32, 64

    key = jax.random.PRNGKey(0)
    kx, kw1, kb1, kw2, kb2 = jax.random.split(key, 5)

    x = jax.random.normal(kx, (batch, seq, d_model), dtype=jnp.float32)
    # nn.Linear(d_model, hidden): weight (hidden, d_model), bias (hidden,)
    w1 = jax.random.normal(kw1, (hidden, d_model), dtype=jnp.float32) * 0.05
    b1 = jax.random.normal(kb1, (hidden,), dtype=jnp.float32) * 0.05
    # nn.Linear(hidden, d_model): weight (d_model, hidden), bias (d_model,)
    w2 = jax.random.normal(kw2, (d_model, hidden), dtype=jnp.float32) * 0.05
    b2 = jax.random.normal(kb2, (d_model,), dtype=jnp.float32) * 0.05

    y = positionwise_ffn(x, w1, b1, w2, b2)
    y = jax.block_until_ready(y)

    # Reference (eval-mode dropout == identity); bf16 compute -> loose tolerance.
    ref = (x @ w1.T + b1) @ w2.T + b2
    assert y.shape == ref.shape
    assert jnp.allclose(y, ref, atol=5e-2, rtol=5e-2), "mismatch vs reference"

    print("KERNEL_OK")
</pallas_src>

<mosaic_0001>
module attributes {stable_mosaic.version = 11 : i64} {
  func.func @ffn_kernel(%arg0: i32, %arg1: i32, %arg2: memref<16x128xbf16, #tpu.memory_space<vmem>>, %arg3: memref<128x128xbf16, #tpu.memory_space<vmem>>, %arg4: memref<1x128xbf16, #tpu.memory_space<vmem>>, %arg5: memref<128x128xbf16, #tpu.memory_space<vmem>>, %arg6: memref<1x128xbf16, #tpu.memory_space<vmem>>, %arg7: memref<16x128xf32, #tpu.memory_space<vmem>>, %arg8: memref<16x128xf32, #tpu.memory_space<vmem>>) attributes {dimension_semantics = [#tpu.dimension_semantics<parallel>, #tpu.dimension_semantics<arbitrary>], iteration_bounds = array<i64: 1, 1>, scalar_prefetch = 0 : i64, scratch_operands = 1 : i64, tpu.core_type = #tpu.core_type<tc>, window_params = [{transform_indices = @transform_0, window_bounds = array<i64: 16, 128>}, {transform_indices = @transform_1, window_bounds = array<i64: 128, 128>}, {transform_indices = @transform_2, window_bounds = array<i64: 1, 128>}, {transform_indices = @transform_3, window_bounds = array<i64: 128, 128>}, {pipeline_mode = #tpu.pipeline_mode<synchronous>, transform_indices = @transform_4, window_bounds = array<i64: 1, 128>}, {transform_indices = @transform_5, window_bounds = array<i64: 16, 128>}]} {
    %c0_i32 = arith.constant 0 : i32
    %0 = arith.cmpi eq, %arg1, %c0_i32 : i32
    %1 = arith.extui %0 : i1 to i32
    %c0_i32_0 = arith.constant 0 : i32
    %2 = arith.cmpi ne, %1, %c0_i32_0 : i32
    scf.if %2 {
      %cst_15 = arith.constant 0.000000e+00 : f32
      %19 = vector.broadcast %cst_15 : f32 to vector<16x128xf32>
      %c0_16 = arith.constant 0 : index
      %c0_17 = arith.constant 0 : index
      %20 = vector.load %arg8[%c0_16, %c0_17] : memref<16x128xf32, #tpu.memory_space<vmem>>, vector<16x128xf32>
      tpu.vector_store %arg8[%c0_16, %c0_17], %19 {strides = array<i32>} : memref<16x128xf32, #tpu.memory_space<vmem>>, vector<16x128xf32>,
    } else {
    }
    %c0 = arith.constant 0 : index
    %c0_1 = arith.constant 0 : index
    %3 = vector.load %arg2[%c0, %c0_1] : memref<16x128xbf16, #tpu.memory_space<vmem>>, vector<16x128xbf16>
    %c0_2 = arith.constant 0 : index
    %c0_3 = arith.constant 0 : index
    %4 = vector.load %arg3[%c0_2, %c0_3] : memref<128x128xbf16, #tpu.memory_space<vmem>>, vector<128x128xbf16>
    %cst = arith.constant dense<0.000000e+00> : vector<16x128xf32>
    %5 = tpu.matmul %3, %4, %cst {dimension_numbers = #tpu.dot_dimension_numbers<[1], [0], [0], [1], [0, 0, 1, 1], [], []>} : vector<16x128xbf16>, vector<128x128xbf16>, vector<16x128xf32> -> vector<16x128xf32>
    %c0_4 = arith.constant 0 : index
    %c0_5 = arith.constant 0 : index
    %6 = vector.load %arg4[%c0_4, %c0_5] : memref<1x128xbf16, #tpu.memory_space<vmem>>, vector<1x128xbf16>
    %7 = arith.extf %6 : vector<1x128xbf16> to vector<1x128xf32>
    %8 = vector.broadcast %7 : vector<1x128xf32> to vector<16x128xf32>
    %9 = arith.addf %5, %8 : vector<16x128xf32>
    %c0_6 = arith.constant 0 : index
    %c0_7 = arith.constant 0 : index
    %10 = vector.load %arg8[%c0_6, %c0_7] : memref<16x128xf32, #tpu.memory_space<vmem>>, vector<16x128xf32>
    %11 = arith.truncf %9 : vector<16x128xf32> to vector<16x128xbf16>
    %c0_8 = arith.constant 0 : index
    %c0_9 = arith.constant 0 : index
    %12 = vector.load %arg5[%c0_8, %c0_9] : memref<128x128xbf16, #tpu.memory_space<vmem>>, vector<128x128xbf16>
    %cst_10 = arith.constant dense<0.000000e+00> : vector<16x128xf32>
    %13 = tpu.matmul %11, %12, %cst_10 {dimension_numbers = #tpu.dot_dimension_numbers<[1], [0], [0], [1], [0, 0, 1, 1], [], []>} : vector<16x128xbf16>, vector<128x128xbf16>, vector<16x128xf32> -> vector<16x128xf32>
    %14 = arith.addf %10, %13 : vector<16x128xf32>
    %c0_11 = arith.constant 0 : index
    %c0_12 = arith.constant 0 : index
    %15 = vector.load %arg8[%c0_11, %c0_12] : memref<16x128xf32, #tpu.memory_space<vmem>>, vector<16x128xf32>
    tpu.vector_store %arg8[%c0_11, %c0_12], %14 {strides = array<i32>} : memref<16x128xf32, #tpu.memory_space<vmem>>, vector<16x128xf32>,
    %c0_i32_13 = arith.constant 0 : i32
    %16 = arith.cmpi eq, %arg1, %c0_i32_13 : i32
    %17 = arith.extui %16 : i1 to i32
    %c0_i32_14 = arith.constant 0 : i32
    %18 = arith.cmpi ne, %17, %c0_i32_14 : i32
    scf.if %18 {
      %c0_15 = arith.constant 0 : index
      %c0_16 = arith.constant 0 : index
      %19 = vector.load %arg8[%c0_15, %c0_16] : memref<16x128xf32, #tpu.memory_space<vmem>>, vector<16x128xf32>
      %c0_17 = arith.constant 0 : index
      %c0_18 = arith.constant 0 : index
      %20 = vector.load %arg6[%c0_17, %c0_18] : memref<1x128xbf16, #tpu.memory_space<vmem>>, vector<1x128xbf16>
      %21 = arith.extf %20 : vector<1x128xbf16> to vector<1x128xf32>
      %22 = vector.broadcast %21 : vector<1x128xf32> to vector<16x128xf32>
      %23 = arith.addf %19, %22 : vector<16x128xf32>
      %c0_19 = arith.constant 0 : index
      %c0_20 = arith.constant 0 : index
      %24 = vector.load %arg7[%c0_19, %c0_20] : memref<16x128xf32, #tpu.memory_space<vmem>>, vector<16x128xf32>
      tpu.vector_store %arg7[%c0_19, %c0_20], %23 {strides = array<i32>} : memref<16x128xf32, #tpu.memory_space<vmem>>, vector<16x128xf32>,
    } else {
    }
    return
  }
  func.func @transform_0(%arg0: i32, %arg1: i32) -> (i32, i32) {
    %c0_i32 = arith.constant 0 : i32
    %c0_i32_0 = arith.constant 0 : i32
    return %arg0, %c0_i32 : i32, i32
  }
  func.func @transform_1(%arg0: i32, %arg1: i32) -> (i32, i32) {
    %c0_i32 = arith.constant 0 : i32
    %c0_i32_0 = arith.constant 0 : i32
    return %c0_i32, %arg1 : i32, i32
  }
  func.func @transform_2(%arg0: i32, %arg1: i32) -> (i32, i32) {
    %c0_i32 = arith.constant 0 : i32
    %c0_i32_0 = arith.constant 0 : i32
    return %c0_i32, %arg1 : i32, i32
  }
  func.func @transform_3(%arg0: i32, %arg1: i32) -> (i32, i32) {
    %c0_i32 = arith.constant 0 : i32
    %c0_i32_0 = arith.constant 0 : i32
    return %arg1, %c0_i32 : i32, i32
  }
  func.func @transform_4(%arg0: i32, %arg1: i32) -> (i32, i32) {
    %c0_i32 = arith.constant 0 : i32
    %c0_i32_0 = arith.constant 0 : i32
    %c0_i32_1 = arith.constant 0 : i32
    return %c0_i32, %c0_i32_0 : i32, i32
  }
  func.func @transform_5(%arg0: i32, %arg1: i32) -> (i32, i32) {
    %c0_i32 = arith.constant 0 : i32
    %c0_i32_0 = arith.constant 0 : i32
    return %arg0, %c0_i32 : i32, i32
  }
}

</mosaic_0001>

<bundles_post_ra>
// kernel: tpu_custom_call.1
= control target key start
LH: loop header
LB: loop body
LE: loop exit
PB: predicated region body
PF: predicated region fallthrough
CT: control target
= control target key end

     0   :  { %10 = vsyncpa [#allocation4], 0  ;;  %s579_s0 = inlined_call_operand.hbm [shape: bf16[16,128], index: 0, kind: input, shape index: {}]   ;;  %s580_s1 = inlined_call_operand.hbm [shape: bf16[128,128], index: 1, kind: input, shape index: {}]   ;;  %s581_s2 = inlined_call_operand.vmem [shape: bf16[1,128], index: 2, kind: input, shape index: {}]   ;;  %s582_s3 = inlined_call_operand.hbm [shape: bf16[128,128], index: 3, kind: input, shape index: {}]   ;;  %s583_s4 = inlined_call_operand.vmem [shape: bf16[1,128], index: 4, kind: input, shape index: {}]   ;;  %s584_s5 = inlined_call_operand.hbm [shape: f32[16,128], index: 5, kind: output, shape index: {}]  }
   0x1   :  { %11 = vsyncpa [#allocation7], 0 }
   0x2   :  { %12 = vsyncpa [#allocation5], 0  ;;  %s521_s18 = smov [#allocation6]   ;;  %s522_s20 = smov [#allocation3]  }
   0x3   :  { %s30_s19 = sshll.u32 %s521_s18, 4  ;;  %s18_s21 = sshll.u32 %s522_s20, 4  ;;  %s31_s19 = int_to_ptr.vmem [resolvable:$true] %s30_s19  ;;  %s19_s21 = int_to_ptr.vmem [resolvable:$true] %s18_s21 }
   0x4   :  { %s443_s22 = scalar_lea.vmem %s31_s19, 1024  ;;  %p448_p1 = scmp.lt.s32.totalorder %s31_s19, %s31_s19 }
   0x5   :  { %p444_p0 = scmp.ne.s32.totalorder %s31_s19, %s443_s22  ;;  %p449_p2 = scmp.lt.s32.totalorder %s443_s22, %s443_s22 }
   0x7   :  { %p450_p3 = por %p449_p2, %p448_p1 }
   0x9   :  { %p451_p4 = pnand %p450_p3, %p444_p0 }
   0xb   :  { %454 = shalt.err (!%p451_p4)
}
   0xc   :  { %s523_s23 = smov 64   ;;  %s524_s24 = smov 4  }
   0xd   :  { %36 = dma.hbm_to_vmem [thread:$0]  %s580_s1, 1024, %s31_s19, [#allocation7], %s523_s23, %s523_s23, %s524_s24  }
   0xe   :  { %s463_s27 = scalar_lea.vmem %s19_s21, 128  ;;  %p468_p6 = scmp.lt.s32.totalorder %s19_s21, %s19_s21 }
   0xf   :  { %p464_p5 = scmp.ne.s32.totalorder %s19_s21, %s463_s27  ;;  %p469_p7 = scmp.lt.s32.totalorder %s463_s27, %s463_s27 }
  0x11   :  { %p470_p8 = por %p469_p7, %p468_p6 }
  0x13   :  { %p471_p9 = pnand %p470_p8, %p464_p5 }
  0x15   :  { %474 = shalt.err (!%p471_p9)
}
  0x16   :  { %24 = dma.hbm_to_vmem [thread:$0]  %s579_s0, 128, %s19_s21, [#allocation4], %s523_s23, %s523_s23, %s524_s24  }
  0x17   :  { %s525_s30 = smov [#allocation8]  }
  0x18   :  { %s44_s6 = sshll.u32 %s525_s30, 4  ;;  %s45_s6 = int_to_ptr.vmem [resolvable:$true] %s44_s6 }
  0x19   :  { %s483_s7 = scalar_lea.vmem %s45_s6, 1024  ;;  %p488_p11 = scmp.lt.s32.totalorder %s45_s6, %s45_s6 }
  0x1a   :  { %p484_p10 = scmp.ne.s32.totalorder %s45_s6, %s483_s7  ;;  %p489_p12 = scmp.lt.s32.totalorder %s483_s7, %s483_s7 }
  0x1c   :  { %p490_p13 = por %p489_p12, %p488_p11 }
  0x1e   :  { %p491_p0 = pnand %p490_p13, %p484_p10 }
  0x20   :  { %494 = shalt.err (!%p491_p0)
}
  0x21   :  { %50 = dma.hbm_to_vmem [thread:$0]  %s582_s3, 1024, %s45_s6, [#allocation7], %s523_s23, %s523_s23, %s524_s24  }
  0x22   :  { %515 = dma.done.wait [#allocation4], 128  }
  0x23   :  { %516 = vsyncadd [#allocation4], 4294967168 }
  0x24   :  { %517 = dma.done.wait [#allocation7], 2048  }
  0x25   :  { %518 = vsyncadd [#allocation7], 4294965248  ;;  %v526_v0 = vmov 0.0   ;;  %vm527_vm0 = vmmov 0   ;;  %v418_v1 = vld [vmem:[#allocation6 + $0x38] sm:$0xff]   ;;  %v419_v2 = vld [vmem:[#allocation6 + $0x30] sm:$0xff]   ;;  %v89_v18 = vlaneseq }
  0x26   :  { %368 = vmatprep.subr.bf16.mxu0 %v526_v0  ;;  %384 = vmatprep.mubr.msk.bf16.mxu0 %vm527_vm0, %v526_v0  ;;  %v420_v3 = vld [vmem:[#allocation6 + $0x28] sm:$0xff]   ;;  %v427_v4 = vld [vmem:[#allocation8 + $0x38] sm:$0xff]   ;;  %v421_v5 = vld [vmem:[#allocation6 + $0x20] sm:$0xff]  }
  0x27   :  { %388 = vmatprep.subr.bf16.mxu1 %v526_v0  ;;  %404 = vmatprep.mubr.msk.bf16.mxu1 %vm527_vm0, %v526_v0  ;;  %v428_v6 = vld [vmem:[#allocation8 + $0x30] sm:$0xff]   ;;  %v422_v7 = vld [vmem:[#allocation6 + $0x18] sm:$0xff]   ;;  %v429_v8 = vld [vmem:[#allocation8 + $0x28] sm:$0xff]   ;;  %v90_v19 = vshrl.u32 %v89_v18, 7 }
  0x28   :  { %369 = vmatpush3.bf16.msra.mxu0 %v418_v1  ;;  %389 = vmatpush3.bf16.msra.mxu1 %v427_v4  ;;  %v423_v9 = vld [vmem:[#allocation6 + $0x10] sm:$0xff]   ;;  %v430_v10 = vld [vmem:[#allocation8 + $0x20] sm:$0xff]   ;;  %v424_v11 = vld [vmem:[#allocation6 + $0x8] sm:$0xff]  }
  0x29   :  { %370 = vmatprep.subr.bf16.mxu0 %v526_v0  ;;  %390 = vmatprep.subr.bf16.mxu1 %v526_v0  ;;  %v431_v12 = vld [vmem:[#allocation8 + $0x18] sm:$0xff]   ;;  %v425_v13 = vld [vmem:[#allocation6] sm:$0xff]   ;;  %v432_v14 = vld [vmem:[#allocation8 + $0x10] sm:$0xff]   ;;  %v91_v22 = vsub.s32 0, %v90_v19 }
  0x2a   :  { %v426_v15 = vld [vmem:[#allocation3] sm:$0xff]   ;;  %v433_v16 = vld [vmem:[#allocation8 + $0x8] sm:$0xff]   ;;  %v434_v17 = vld [vmem:[#allocation8] sm:$0xff]  }
  0x2b   :  { %v87_v20 = vld [vmem:[%s581_s2] sm:$0x1]  ;;  %s528_s2 = smov [#allocation9]  }
  0x2c   :  { %371 = vmatpush3.bf16.msra.mxu0 %v419_v2  ;;  %391 = vmatpush3.bf16.msra.mxu1 %v428_v6  ;;  %v88_v21 = vunpack.c.l.bf16 %v87_v20  ;;  %v305_v31 = vld [vmem:[%s583_s4] sm:$0x1]  ;;  %s320_s11 = sshll.u32 %s528_s2, 4  ;;  %s321_s11 = int_to_ptr.vmem [resolvable:$true] %s320_s11 }
  0x2d   :  { %372 = vmatprep.subr.bf16.mxu0 %v526_v0  ;;  %392 = vmatprep.subr.bf16.mxu1 %v526_v0  ;;  %v306_v32 = vunpack.c.l.bf16 %v305_v31  ;;  %s495_s12 = scalar_lea.vmem %s321_s11, 256  ;;  %p500_p2 = scmp.lt.s32.totalorder %s321_s11, %s321_s11 }
  0x2e   :  { %v92_v24 = vrot.slane %v88_v21, %v91_v22  ;;  %p496_p1 = scmp.ne.s32.totalorder %s321_s11, %s495_s12  ;;  %p501_p3 = scmp.lt.s32.totalorder %s495_s12, %s495_s12 }
  0x2f   :  { %v310_v33 = vrot.slane %v306_v32, %v91_v22 }
  0x30   :  { %373 = vmatpush3.bf16.msra.mxu0 %v420_v3  ;;  %393 = vmatpush3.bf16.msra.mxu1 %v429_v8  ;;  %p502_p4 = por %p501_p3, %p500_p2 }
  0x31   :  { %374 = vmatprep.subr.bf16.mxu0 %v526_v0  ;;  %394 = vmatprep.subr.bf16.mxu1 %v526_v0 }
  0x32   :  { %p503_p5 = pnand %p502_p4, %p496_p1 }
  0x34   :  { %375 = vmatpush3.bf16.msra.mxu0 %v421_v5  ;;  %395 = vmatpush3.bf16.msra.mxu1 %v430_v10 }
  0x35   :  { %376 = vmatprep.subr.bf16.mxu0 %v526_v0  ;;  %396 = vmatprep.subr.bf16.mxu1 %v526_v0 }
  0x38   :  { %377 = vmatpush3.bf16.msra.mxu0 %v422_v7  ;;  %397 = vmatpush3.bf16.msra.mxu1 %v431_v12 }
  0x39   :  { %378 = vmatprep.subr.bf16.mxu0 %v526_v0  ;;  %398 = vmatprep.subr.bf16.mxu1 %v526_v0 }
  0x3c   :  { %379 = vmatpush3.bf16.msra.mxu0 %v423_v9  ;;  %399 = vmatpush3.bf16.msra.mxu1 %v432_v14 }
  0x3d   :  { %380 = vmatprep.subr.bf16.mxu0 %v526_v0  ;;  %400 = vmatprep.subr.bf16.mxu1 %v526_v0 }
  0x40   :  { %381 = vmatpush3.bf16.msra.mxu0 %v424_v11  ;;  %401 = vmatpush3.bf16.msra.mxu1 %v433_v16 }
  0x41   :  { %382 = vmatprep.subr.bf16.mxu0 %v526_v0  ;;  %402 = vmatprep.subr.bf16.mxu1 %v526_v0 }
  0x44   :  { %383 = vmatpush3.bf16.msra.mxu0 %v425_v13  ;;  %403 = vmatpush3.bf16.msra.mxu1 %v434_v17 }
  0x47   :  { %385 = vmatmul.mubr.bf16.vlgmr.msra.gmra.mxu0 %v426_v15 }
 0x107   :  { %v181_v23 = vpop.f32.mrf.mxu0 }
 0x108   :  { %v182_v27 = vadd.f32 %v181_v23, %v92_v24 }
 0x109   :  { %v386_v25 = vpop.f32.mrf.mxu0 }
 0x10b   :  { %v184_v26 = vpop.f32.mrf.mxu0 }
 0x10c   :  { %v185_v28 = vadd.f32 %v184_v26, %v92_v24 }
 0x10d   :  { %v387_v29 = vpop.f32.mrf.mxu0 }
 0x10e   :  { %v190_v30 = vpack.c.bf16 %v185_v28, %v182_v27 }
 0x110   :  { %405 = vmatmul.mubr.bf16.vlgmr.msra.gmra.mxu1 %v190_v30 }
 0x1d0   :  { %v289_v34 = vpop.f32.mrf.mxu1 }
 0x1d1   :  { %v311_v35 = vadd.f32 %v310_v33, %v289_v34 }
 0x1d2   :  { %v406_v36 = vpop.f32.mrf.mxu1 }
 0x1d3   :  { %313 = vst [vmem:[#allocation9] sm:$0xff] %v311_v35 }
 0x1d4   :  { %v292_v37 = vpop.f32.mrf.mxu1 }
 0x1d5   :  { %v312_v38 = vadd.f32 %v310_v33, %v292_v37 }
 0x1d6   :  { %v407_v39 = vpop.f32.mrf.mxu1 }
 0x1d7   :  { %314 = vst [vmem:[#allocation9 + $0x8] sm:$0xff] %v312_v38 }
 0x1d8   :  { %506 = shalt.err (!%p503_p5)
}
 0x1d9   :  { %s529_s4 = smov 128   ;;  %s530_s13 = smov 8  }
 0x1da   :  { %326 = dma.vmem_to_hbm [thread:$0]  %s321_s11, 256, %s584_s5, [#allocation5], %s529_s4, %s529_s4, %s530_s13  }
 0x1db   :  { %519 = dma.done.wait [#allocation5], 256  }
 0x1dc   :  { %520 = vsyncadd [#allocation5], 4294967040 }
 0x1dd   :  { %330 = vsyncpa [#allocation4], 1 }
 0x1de   :  { %331 = vsyncpa [#allocation7], 1 }
 0x1df   :  { %332 = vsyncpa [#allocation5], 1 }

</bundles_post_ra>
